<compile_context>
chip_gen: v5e
topology: v5e:2x2
jax: 0.10.0
libtpu: 0.0.40
codegen_flags: <defaults>
</compile_context>

<pallas_src>
import jax
import jax.numpy as jnp
from jax.experimental import pallas as pl
from jax.experimental.pallas import tpu as pltpu


# Packed input slab (6, 8, C) rows:
#   0: slowness*dx   1: slowness*dy   2: slowness*dz
#   3: base time (event_time + station_dt)
#   4: phase_time    5: phase_weight
# Packed output slab (2, 8, C):  0: pred_time   1: residual
# Loss output: one (8, 128) per-lane partial-sum block per tile.
def travel_time_kernel(data_ref, out_ref, loss_ref):
    sdx = data_ref[0]          # (8, T) full-vreg tiles
    sdy = data_ref[1]
    sdz = data_ref[2]
    base = data_ref[3]
    ph_t = data_ref[4]
    w = data_ref[5]

    # sqrt((s*dx)^2 + (s*dy)^2 + (s*dz)^2) == slowness * dist  (slowness > 0)
    tt = jnp.sqrt(sdx * sdx + sdy * sdy + sdz * sdz)     # (8, T)
    pred = base + tt                                     # (8, T)
    res = ph_t - pred                                    # (8, T)

    out_ref[0] = pred
    out_ref[1] = res

    # F.huber_loss(..., delta=1.0, reduction='none') * weight.
    err = jnp.abs(res)
    huber = jnp.where(err <= 1.0, 0.5 * err * err, err - 0.5)
    wl = huber * w                                       # (8, T)

    # Fold the lane axis into one (8,128) partial-sum block with plain VPU adds
    # (no iota/mask, no cross-lane XLU reduce); wrapper finishes the sum.
    t = wl.shape[1]
    acc = wl[:, 0:128]
    for j in range(1, t // 128):
        acc = acc + wl[:, j * 128:(j + 1) * 128]
    loss_ref[...] = acc


def travel_time_forward(params, station_index, event_index, phase_type,
                        phase_time, phase_weight,
                        velocity=(6.0, 6.0 / 1.73), block_picks=65536):
    """JAX/Pallas equivalent of TravelTime.forward (eikonal=None)."""
    n = int(station_index.shape[0])

    # ---- embedding gathers + free algebra (fusable producer) ---------------
    slowness = (1.0 / jnp.asarray(velocity, jnp.float32))[phase_type]       # (N,)
    ev_loc = params["event_loc"][event_index].astype(jnp.float32)           # (N, 3)
    st_loc = params["station_loc"][station_index].astype(jnp.float32)       # (N, 3)
    sd = (ev_loc - st_loc) * slowness[:, None]                              # (N, 3)
    base = (params["event_time"][event_index, 0]
            + params["station_dt"][station_index, 0]).astype(jnp.float32)   # (N,)

    data = jnp.stack([sd[:, 0], sd[:, 1], sd[:, 2], base,
                      phase_time.astype(jnp.float32),
                      phase_weight.astype(jnp.float32)], axis=0)            # (6, N)

    # ---- pad + repack to (6, 8, C); tile the lane (column) axis -------------
    block_picks = max(1024, (block_picks // 1024) * 1024)  # keep 8*128 granularity
    t_lanes_max = block_picks // 8                          # multiple of 128
    c_needed = pl.cdiv(n, 8)
    t = min(t_lanes_max, pl.cdiv(c_needed, 128) * 128)      # tile lanes (mult of 128)
    c_pad = pl.cdiv(c_needed, t) * t
    n_pad = 8 * c_pad
    g = c_pad // t
    if n_pad != n:
        data = jnp.pad(data, ((0, 0), (0, n_pad - n)))      # weight row pads with 0
    data = data.reshape(6, 8, c_pad)

    out, loss_partial = pl.pallas_call(
        travel_time_kernel,
        grid=(g,),
        in_specs=[pl.BlockSpec((6, 8, t), lambda i: (0, 0, i))],
        out_specs=(pl.BlockSpec((2, 8, t), lambda i: (0, 0, i)),
                   pl.BlockSpec((8, 128), lambda i: (0, i))),
        out_shape=(jax.ShapeDtypeStruct((2, 8, c_pad), jnp.float32),
                   jax.ShapeDtypeStruct((8, g * 128), jnp.float32)),
        compiler_params=pltpu.CompilerParams(
            dimension_semantics=("parallel",),
            vmem_limit_bytes=32 * 1024 * 1024,
            # Let XLA fuse the gather/elementwise slab producer into the
            # pallas_call operand (avoids materializing the (6,N) slab in HBM).
            allow_input_fusion=[True]),
    )(data)

    out = out.reshape(2, n_pad)
    return {"phase_time": out[0, :n],
            "residual_s": out[1, :n],
            "loss": jnp.sum(loss_partial)}


def reference_forward(params, station_index, event_index, phase_type,
                      phase_time, phase_weight, velocity=(6.0, 6.0 / 1.73)):
    ev_loc = params["event_loc"][event_index]
    ev_t = params["event_time"][event_index, 0]
    st_loc = params["station_loc"][station_index]
    st_dt = params["station_dt"][station_index, 0]
    vel = jnp.asarray(velocity, jnp.float32)[phase_type]
    dist = jnp.linalg.norm(ev_loc - st_loc, axis=-1)
    pred = ev_t + dist / vel + st_dt
    res = phase_time - pred
    err = jnp.abs(res)
    huber = jnp.where(err <= 1.0, 0.5 * err * err, err - 0.5)
    return {"phase_time": pred, "residual_s": res,
            "loss": jnp.sum(huber * phase_weight)}


if __name__ == "__main__":
    num_event = 16
    num_station = 8
    num_picks = 200  # deliberately NOT a multiple of 8 or 128 to exercise padding

    key = jax.random.PRNGKey(0)
    k = jax.random.split(key, 8)

    # Deterministic parameter init (shapes match the nn.Embedding weights).
    params = {
        "event_loc": jax.random.normal(k[0], (num_event, 3), jnp.float32) * 5.0,
        "event_time": jax.random.normal(k[1], (num_event, 1), jnp.float32),
        "station_loc": jax.random.normal(k[2], (num_station, 3), jnp.float32) * 5.0,
        "station_dt": jax.random.normal(k[3], (num_station, 1), jnp.float32) * 0.1,
    }

    station_index = jax.random.randint(k[4], (num_picks,), 0, num_station, jnp.int32)
    event_index = jax.random.randint(k[5], (num_picks,), 0, num_event, jnp.int32)
    phase_type = jax.random.randint(k[6], (num_picks,), 0, 2, jnp.int32)  # 0=P, 1=S
    phase_weight = jax.random.uniform(k[7], (num_picks,), jnp.float32, 0.5, 1.0)

    # Synthetic observed phase times (reference prediction + noise).
    ref0 = reference_forward(params, station_index, event_index, phase_type,
                             jnp.zeros((num_picks,), jnp.float32), phase_weight)
    phase_time = ref0["phase_time"] + 0.3 * jax.random.normal(
        jax.random.PRNGKey(42), (num_picks,), jnp.float32)

    out = travel_time_forward(params, station_index, event_index, phase_type,
                              phase_time, phase_weight)
    jax.block_until_ready(out)

    ref = reference_forward(params, station_index, event_index, phase_type,
                            phase_time, phase_weight)
    assert jnp.allclose(out["phase_time"], ref["phase_time"], atol=1e-4), "pred mismatch"
    assert jnp.allclose(out["residual_s"], ref["residual_s"], atol=1e-4), "residual mismatch"
    assert jnp.allclose(out["loss"], ref["loss"], atol=1e-3, rtol=1e-4), "loss mismatch"

    print("KERNEL_OK")
</pallas_src>

<mosaic_0001>
module attributes {stable_mosaic.version = 11 : i64} {
  func.func @travel_time_kernel(%arg0: i32, %arg1: memref<6x8x128xf32, #tpu.memory_space<vmem>>, %arg2: memref<2x8x128xf32, #tpu.memory_space<vmem>>, %arg3: memref<8x128xf32, #tpu.memory_space<vmem>>) attributes {dimension_semantics = [#tpu.dimension_semantics<parallel>], iteration_bounds = array<i64: 1>, scalar_prefetch = 0 : i64, scratch_operands = 0 : i64, tpu.core_type = #tpu.core_type<tc>, window_params = [{transform_indices = @transform_0, window_bounds = array<i64: 6, 8, 128>}, {transform_indices = @transform_1, window_bounds = array<i64: 2, 8, 128>}, {transform_indices = @transform_2, window_bounds = array<i64: 8, 128>}]} {
    %c0 = arith.constant 0 : index
    %c0_0 = arith.constant 0 : index
    %c0_1 = arith.constant 0 : index
    %0 = vector.load %arg1[%c0, %c0_0, %c0_1] : memref<6x8x128xf32, #tpu.memory_space<vmem>>, vector<1x8x128xf32>
    %1 = vector.shape_cast %0 : vector<1x8x128xf32> to vector<8x128xf32>
    %c1 = arith.constant 1 : index
    %c0_2 = arith.constant 0 : index
    %c0_3 = arith.constant 0 : index
    %2 = vector.load %arg1[%c1, %c0_2, %c0_3] : memref<6x8x128xf32, #tpu.memory_space<vmem>>, vector<1x8x128xf32>
    %3 = vector.shape_cast %2 : vector<1x8x128xf32> to vector<8x128xf32>
    %c2 = arith.constant 2 : index
    %c0_4 = arith.constant 0 : index
    %c0_5 = arith.constant 0 : index
    %4 = vector.load %arg1[%c2, %c0_4, %c0_5] : memref<6x8x128xf32, #tpu.memory_space<vmem>>, vector<1x8x128xf32>
    %5 = vector.shape_cast %4 : vector<1x8x128xf32> to vector<8x128xf32>
    %c3 = arith.constant 3 : index
    %c0_6 = arith.constant 0 : index
    %c0_7 = arith.constant 0 : index
    %6 = vector.load %arg1[%c3, %c0_6, %c0_7] : memref<6x8x128xf32, #tpu.memory_space<vmem>>, vector<1x8x128xf32>
    %7 = vector.shape_cast %6 : vector<1x8x128xf32> to vector<8x128xf32>
    %c4 = arith.constant 4 : index
    %c0_8 = arith.constant 0 : index
    %c0_9 = arith.constant 0 : index
    %8 = vector.load %arg1[%c4, %c0_8, %c0_9] : memref<6x8x128xf32, #tpu.memory_space<vmem>>, vector<1x8x128xf32>
    %9 = vector.shape_cast %8 : vector<1x8x128xf32> to vector<8x128xf32>
    %c5 = arith.constant 5 : index
    %c0_10 = arith.constant 0 : index
    %c0_11 = arith.constant 0 : index
    %10 = vector.load %arg1[%c5, %c0_10, %c0_11] : memref<6x8x128xf32, #tpu.memory_space<vmem>>, vector<1x8x128xf32>
    %11 = vector.shape_cast %10 : vector<1x8x128xf32> to vector<8x128xf32>
    %12 = arith.mulf %1, %1 : vector<8x128xf32>
    %13 = arith.mulf %3, %3 : vector<8x128xf32>
    %14 = arith.addf %12, %13 : vector<8x128xf32>
    %15 = arith.mulf %5, %5 : vector<8x128xf32>
    %16 = arith.addf %14, %15 : vector<8x128xf32>
    %17 = math.sqrt %16 : vector<8x128xf32>
    %18 = arith.addf %7, %17 : vector<8x128xf32>
    %19 = arith.subf %9, %18 : vector<8x128xf32>
    %c0_12 = arith.constant 0 : index
    %c0_13 = arith.constant 0 : index
    %c0_14 = arith.constant 0 : index
    %20 = vector.load %arg2[%c0_12, %c0_13, %c0_14] : memref<2x8x128xf32, #tpu.memory_space<vmem>>, vector<1x8x128xf32>
    %21 = vector.shape_cast %20 : vector<1x8x128xf32> to vector<8x128xf32>
    %22 = vector.shape_cast %18 : vector<8x128xf32> to vector<1x8x128xf32>
    tpu.vector_store %arg2[%c0_12, %c0_13, %c0_14], %22 {strides = array<i32>} : memref<2x8x128xf32, #tpu.memory_space<vmem>>, vector<1x8x128xf32>,
    %c1_15 = arith.constant 1 : index
    %c0_16 = arith.constant 0 : index
    %c0_17 = arith.constant 0 : index
    %23 = vector.load %arg2[%c1_15, %c0_16, %c0_17] : memref<2x8x128xf32, #tpu.memory_space<vmem>>, vector<1x8x128xf32>
    %24 = vector.shape_cast %23 : vector<1x8x128xf32> to vector<8x128xf32>
    %25 = vector.shape_cast %19 : vector<8x128xf32> to vector<1x8x128xf32>
    tpu.vector_store %arg2[%c1_15, %c0_16, %c0_17], %25 {strides = array<i32>} : memref<2x8x128xf32, #tpu.memory_space<vmem>>, vector<1x8x128xf32>,
    %26 = math.absf %19 : vector<8x128xf32>
    %cst = arith.constant 1.000000e+00 : f32
    %27 = vector.broadcast %cst : f32 to vector<8x128xf32>
    %28 = arith.cmpf ole, %26, %27 : vector<8x128xf32>
    %cst_18 = arith.constant 5.000000e-01 : f32
    %29 = vector.broadcast %cst_18 : f32 to vector<8x128xf32>
    %30 = arith.mulf %29, %26 : vector<8x128xf32>
    %31 = arith.mulf %30, %26 : vector<8x128xf32>
    %cst_19 = arith.constant 5.000000e-01 : f32
    %32 = vector.broadcast %cst_19 : f32 to vector<8x128xf32>
    %33 = arith.subf %26, %32 : vector<8x128xf32>
    %34 = arith.select %28, %31, %33 : vector<8x128xi1>, vector<8x128xf32>
    %35 = arith.mulf %34, %11 : vector<8x128xf32>
    %c0_20 = arith.constant 0 : index
    %c0_21 = arith.constant 0 : index
    %36 = vector.load %arg3[%c0_20, %c0_21] : memref<8x128xf32, #tpu.memory_space<vmem>>, vector<8x128xf32>
    tpu.vector_store %arg3[%c0_20, %c0_21], %35 {strides = array<i32>} : memref<8x128xf32, #tpu.memory_space<vmem>>, vector<8x128xf32>,
    return
  }
  func.func @transform_0(%arg0: i32) -> (i32, i32, i32) {
    %c0_i32 = arith.constant 0 : i32
    %c0_i32_0 = arith.constant 0 : i32
    %c0_i32_1 = arith.constant 0 : i32
    return %c0_i32, %c0_i32_0, %arg0 : i32, i32, i32
  }
  func.func @transform_1(%arg0: i32) -> (i32, i32, i32) {
    %c0_i32 = arith.constant 0 : i32
    %c0_i32_0 = arith.constant 0 : i32
    %c0_i32_1 = arith.constant 0 : i32
    return %c0_i32, %c0_i32_0, %arg0 : i32, i32, i32
  }
  func.func @transform_2(%arg0: i32) -> (i32, i32) {
    %c0_i32 = arith.constant 0 : i32
    %c0_i32_0 = arith.constant 0 : i32
    return %c0_i32, %arg0 : i32, i32
  }
}

</mosaic_0001>

<bundles_post_ra>
// kernel: tpu_custom_call.1
= control target key start
LH: loop header
LB: loop body
LE: loop exit
PB: predicated region body
PF: predicated region fallthrough
CT: control target
= control target key end

     0   :  { %8 = vsyncpa [#allocation3], 0  ;;  %s225_s0 = inlined_call_operand.hbm [shape: f32[6,8,128], index: 0, kind: input, shape index: {}]   ;;  %s226_s1 = inlined_call_operand.hbm [shape: f32[2,8,128], index: 1, kind: output, shape index: {0}]   ;;  %s227_s2 = inlined_call_operand.hbm [shape: f32[8,128], index: 2, kind: output, shape index: {1}]  }
   0x1   :  { %9 = vsyncpa [#allocation4], 0 }
   0x2   :  { %10 = vsyncpa [#allocation7], 0  ;;  %s15_s11 = sshll.u32 %s225_s0, 4  ;;  %s190_s12 = smov [#allocation2]   ;;  %s16_s11 = int_to_ptr.hbm [resolvable:$true] %s15_s11 }
   0x3   :  { %s17_s13 = sshll.u32 %s190_s12, 4  ;;  %s191_s14 = smov 128   ;;  %s18_s13 = int_to_ptr.vmem [resolvable:$true] %s17_s13 }
   0x4   :  { %s192_s15 = smov 8  }
   0x5   :  { %23 = dma.hbm_to_vmem [thread:$0]  %s16_s11, 768, %s18_s13, [#allocation3], %s191_s14, %s191_s14, %s192_s15  }
   0x6   :  { %184 = dma.done.wait [#allocation3], 768  }
   0x7   :  { %185 = vsyncadd [#allocation3], 4294966528  ;;  %v28_v0 = vld [vmem:[#allocation2] sm:$0xff]  ;;  %v30_v1 = vld [vmem:[#allocation2 + $0x8] sm:$0xff]  ;;  %s193_s0 = smov [#allocation5]   ;;  %s75_s19 = sshll.u32 %s226_s1, 4  ;;  %s76_s19 = int_to_ptr.hbm [resolvable:$true] %s75_s19 }
   0x8   :  { %v32_v2 = vld [vmem:[#allocation2 + $0x10] sm:$0xff]  ;;  %v39_v3 = vmul.f32 %v28_v0, %v28_v0  ;;  %v40_v4 = vmul.f32 %v30_v1, %v30_v1  ;;  %v34_v16 = vld [vmem:[#allocation2 + $0x18] sm:$0xff]  ;;  %v36_v19 = vld [vmem:[#allocation2 + $0x20] sm:$0xff]  ;;  %s73_s16 = sshll.u32 %s193_s0, 4  ;;  %s194_s20 = smov [#allocation6]   ;;  %s74_s16 = int_to_ptr.vmem [resolvable:$true] %s73_s16 }
   0x9   :  { %v42_v5 = vmul.f32 %v32_v2, %v32_v2  ;;  %v38_v25 = vld [vmem:[#allocation2 + $0x28] sm:$0xff]  ;;  %s87_s21 = sshll.u32 %s194_s20, 4  ;;  %s89_s23 = sshll.u32 %s227_s2, 4  ;;  %s88_s21 = int_to_ptr.vmem [resolvable:$true] %s87_s21  ;;  %s90_s23 = int_to_ptr.hbm [resolvable:$true] %s89_s23 }
   0xa   :  { %v41_v6 = vadd.f32 %v40_v4, %v39_v3 }
   0xc   :  { %v43_v7 = vadd.f32 %v42_v5, %v41_v6 }
   0xe   :  { %110 = vrsqrt.f32 %v43_v7  ;;  %vm51_vm0 = vcmp.eq.f32.partialorder %v43_v7, inf  ;;  %v54_v14 = vand.u32 2147483648, %v43_v7  ;;  %vm53_vm1 = vcmp.eq.f32.partialorder %v43_v7, 0.0 }
  0x14   :  { %v111_v8 = vpop.eup %110 }
  0x15   :  { %v45_v9 = vmul.f32 %v111_v8, %v43_v7 }
  0x17   :  { %v46_v10 = vmul.f32 %v111_v8, %v45_v9 }
  0x19   :  { %v47_v11 = vmul.f32 0.5, %v46_v10 }
  0x1b   :  { %v48_v12 = vsub.f32 1.5, %v47_v11 }
  0x1d   :  { %v49_v13 = vmul.f32 %v111_v8, %v48_v12 }
  0x1f   :  { %v50_v15 = vmul.f32 %v49_v13, %v43_v7 }
  0x21   :  { %v52_v17 = vsel %vm51_vm0, %v43_v7, %v50_v15 }
  0x22   :  { %v55_v18 = vsel %vm53_vm1, %v54_v14, %v52_v17 }
  0x23   :  { %v56_v20 = vadd.f32 %v55_v18, %v34_v16 }
  0x25   :  { %58 = vst [vmem:[#allocation5] sm:$0xff] %v56_v20  ;;  %v57_v21 = vsub.f32 %v36_v19, %v56_v20 }
  0x27   :  { %60 = vst [vmem:[#allocation5 + $0x8] sm:$0xff] %v57_v21  ;;  %v61_v22 = vand.u32 2147483647, %v57_v21 }
  0x28   :  { %81 = dma.vmem_to_hbm [thread:$0]  %s74_s16, 256, %s76_s19, [#allocation4], %s191_s14, %s191_s14, %s192_s15  }
  0x29   :  { %v63_v23 = vmul.f32 0.5, %v61_v22  ;;  %v104_v24 = vadd.f32 -0.5, %v61_v22  ;;  %vm62_vm2 = vcmp.le.f32.partialorder %v61_v22, 1.0 }
  0x2b   :  { %v64_v26 = vmul.f32 %v63_v23, %v61_v22 }
  0x2d   :  { %v66_v27 = vsel %vm62_vm2, %v64_v26, %v104_v24 }
  0x2e   :  { %v67_v28 = vmul.f32 %v66_v27, %v38_v25 }
  0x30   :  { %68 = vst [vmem:[#allocation6] sm:$0xff] %v67_v28 }
  0x31   :  { %92 = dma.vmem_to_hbm [thread:$0]  %s88_s21, 128, %s90_s23, [#allocation7]  }
  0x32   :  { %186 = dma.done.wait [#allocation4], 256  }
  0x33   :  { %187 = vsyncadd [#allocation4], 4294967040 }
  0x34   :  { %188 = dma.done.wait [#allocation7], 128  }
  0x35   :  { %189 = vsyncadd [#allocation7], 4294967168 }
  0x36   :  { %101 = vsyncpa [#allocation3], 1 }
  0x37   :  { %102 = vsyncpa [#allocation4], 1 }
  0x38   :  { %103 = vsyncpa [#allocation7], 1 }

</bundles_post_ra>
